<compile_context>
chip_gen: v6e
topology: v6e:2x2x1
jax: 0.10.0
libtpu: 0.0.40
codegen_flags: <defaults>
</compile_context>

<pallas_src>
import functools

import jax
import jax.numpy as jnp
from jax.experimental import pallas as pl
from jax.experimental.pallas import tpu as pltpu


def _round_up(n, m):
    return ((n + m - 1) // m) * m


def _qnet_kernel(x_ref,
                 w1_ref, b1_ref,
                 w2_ref, b2_ref,
                 w3_ref, b3_ref,
                 w4_ref, b4_ref,
                 out_ref):
    """Fused forward: relu(relu(relu(x@W1+b1)@W2+b2)@W3+b3)@W4+b4 for one batch tile."""
    x = x_ref[...]

    h = jnp.dot(x, w1_ref[...], preferred_element_type=jnp.float32) + b1_ref[...]
    h = jnp.maximum(h, 0.0)

    h = jnp.dot(h, w2_ref[...], preferred_element_type=jnp.float32) + b2_ref[...]
    h = jnp.maximum(h, 0.0)

    h = jnp.dot(h, w3_ref[...], preferred_element_type=jnp.float32) + b3_ref[...]
    h = jnp.maximum(h, 0.0)

    h = jnp.dot(h, w4_ref[...], preferred_element_type=jnp.float32) + b4_ref[...]
    out_ref[...] = h.astype(out_ref.dtype)


@functools.partial(jax.jit, static_argnames=("block_b", "min_grid_steps"))
def qnetwork_forward(x, params, block_b=1024, min_grid_steps=4):
    """x: [B, state_size] float32. params: dict of [in,out] weights / [1,out] biases."""
    batch, state_size = x.shape
    action_size = params["w4"].shape[1]

    # Batch tiling:
    #  - big tiles (up to block_b rows) to amortize the ~0.35 us per-grid-step
    #    pipeline overhead,
    #  - but capped so the grid keeps >= min_grid_steps steps, so the
    #    "parallel" batch axis can be sharded across v7x's two TensorCores,
    #  - always a multiple of 8 sublanes; tiny batches collapse to one ragged
    #    tile (OOB rows masked on the output write).
    tb = min(block_b, max(8, _round_up(pl.cdiv(batch, min_grid_steps), 8)))
    grid = (pl.cdiv(batch, tb),)

    def resident(arr):
        # Weights/biases: same block for every grid step -> DMA'd once, stay in VMEM.
        return pl.BlockSpec(arr.shape, lambda i: (0, 0))

    hidden = (128, 64, 32)
    flops = 2 * batch * (state_size * hidden[0] + hidden[0] * hidden[1]
                         + hidden[1] * hidden[2] + hidden[2] * action_size)
    bytes_accessed = 4 * (batch * state_size + batch * action_size
                          + state_size * hidden[0] + hidden[0] * hidden[1]
                          + hidden[1] * hidden[2] + hidden[2] * action_size
                          + hidden[0] + hidden[1] + hidden[2] + action_size)

    out = pl.pallas_call(
        _qnet_kernel,
        out_shape=jax.ShapeDtypeStruct((batch, action_size), jnp.float32),
        grid=grid,
        in_specs=[
            pl.BlockSpec((tb, state_size), lambda i: (i, 0)),
            resident(params["w1"]), resident(params["b1"]),
            resident(params["w2"]), resident(params["b2"]),
            resident(params["w3"]), resident(params["b3"]),
            resident(params["w4"]), resident(params["b4"]),
        ],
        out_specs=pl.BlockSpec((tb, action_size), lambda i: (i, 0)),
        compiler_params=pltpu.CompilerParams(
            dimension_semantics=("parallel",)),
        cost_estimate=pl.CostEstimate(flops=flops, transcendentals=0,
                                      bytes_accessed=bytes_accessed),
    )(x,
      params["w1"], params["b1"],
      params["w2"], params["b2"],
      params["w3"], params["b3"],
      params["w4"], params["b4"])

    return out


def init_qnetwork_params(key, state_size, action_size):
    """PyTorch nn.Linear-style init (uniform +/- 1/sqrt(fan_in)).

    Weights stored transposed relative to PyTorch: [in, out]. Biases kept 2D
    ([1, out]) for TPU-friendly broadcasting.
    """
    sizes = [(state_size, 128), (128, 64), (64, 32), (32, action_size)]
    params = {}
    keys = jax.random.split(key, 2 * len(sizes))
    for i, (fan_in, fan_out) in enumerate(sizes):
        bound = 1.0 / jnp.sqrt(jnp.float32(fan_in))
        w = jax.random.uniform(keys[2 * i], (fan_in, fan_out),
                               minval=-bound, maxval=bound, dtype=jnp.float32)
        b = jax.random.uniform(keys[2 * i + 1], (1, fan_out),
                               minval=-bound, maxval=bound, dtype=jnp.float32)
        params[f"w{i + 1}"] = w
        params[f"b{i + 1}"] = b
    return params


def qnetwork_forward_ref(x, params):
    """Pure-JAX reference for correctness checking."""
    h = x
    for i in range(1, 4):
        h = jnp.maximum(h @ params[f"w{i}"] + params[f"b{i}"], 0.0)
    return h @ params["w4"] + params["b4"]


if __name__ == "__main__":
    key = jax.random.PRNGKey(0)
    k_params, k_x_small, k_x_big = jax.random.split(key, 3)

    state_size = 8
    action_size = 4
    params = init_qnetwork_params(k_params, state_size, action_size)

    # Small demo batch (single ragged tile, OOB output rows masked on write).
    x_small = jax.random.normal(k_x_small, (2, state_size), dtype=jnp.float32)
    out_small = jax.block_until_ready(qnetwork_forward(x_small, params))
    ref_small = qnetwork_forward_ref(x_small, params)
    assert out_small.shape == (2, action_size)
    assert jnp.allclose(out_small, ref_small, atol=1e-5, rtol=1e-5), \
        "small-batch mismatch vs reference"

    # Larger, non-multiple batch (multi-step grid with a ragged last block).
    x_big = jax.random.normal(k_x_big, (300, state_size), dtype=jnp.float32)
    out_big = jax.block_until_ready(qnetwork_forward(x_big, params))
    ref_big = qnetwork_forward_ref(x_big, params)
    assert out_big.shape == (300, action_size)
    assert jnp.allclose(out_big, ref_big, atol=1e-4, rtol=1e-4), \
        "large-batch mismatch vs reference"

    print("KERNEL_OK")
</pallas_src>

<mosaic_0001>
module attributes {stable_mosaic.version = 11 : i64} {
  func.func @_qnet_kernel(%arg0: i32, %arg1: memref<8x8xf32, #tpu.memory_space<vmem>>, %arg2: memref<8x128xf32, #tpu.memory_space<vmem>>, %arg3: memref<1x128xf32, #tpu.memory_space<vmem>>, %arg4: memref<128x64xf32, #tpu.memory_space<vmem>>, %arg5: memref<1x64xf32, #tpu.memory_space<vmem>>, %arg6: memref<64x32xf32, #tpu.memory_space<vmem>>, %arg7: memref<1x32xf32, #tpu.memory_space<vmem>>, %arg8: memref<32x4xf32, #tpu.memory_space<vmem>>, %arg9: memref<1x4xf32, #tpu.memory_space<vmem>>, %arg10: memref<8x4xf32, #tpu.memory_space<vmem>>) attributes {dimension_semantics = [#tpu.dimension_semantics<parallel>], iteration_bounds = array<i64: 1>, scalar_prefetch = 0 : i64, scratch_operands = 0 : i64, tpu.core_type = #tpu.core_type<tc>, window_params = [{transform_indices = @transform_0, window_bounds = array<i64: 8, 8>}, {pipeline_mode = #tpu.pipeline_mode<synchronous>, transform_indices = @transform_1, window_bounds = array<i64: 8, 128>}, {pipeline_mode = #tpu.pipeline_mode<synchronous>, transform_indices = @transform_2, window_bounds = array<i64: 1, 128>}, {pipeline_mode = #tpu.pipeline_mode<synchronous>, transform_indices = @transform_3, window_bounds = array<i64: 128, 64>}, {pipeline_mode = #tpu.pipeline_mode<synchronous>, transform_indices = @transform_4, window_bounds = array<i64: 1, 64>}, {pipeline_mode = #tpu.pipeline_mode<synchronous>, transform_indices = @transform_5, window_bounds = array<i64: 64, 32>}, {pipeline_mode = #tpu.pipeline_mode<synchronous>, transform_indices = @transform_6, window_bounds = array<i64: 1, 32>}, {pipeline_mode = #tpu.pipeline_mode<synchronous>, transform_indices = @transform_7, window_bounds = array<i64: 32, 4>}, {pipeline_mode = #tpu.pipeline_mode<synchronous>, transform_indices = @transform_8, window_bounds = array<i64: 1, 4>}, {transform_indices = @transform_9, window_bounds = array<i64: 8, 4>}]} {
    %c0 = arith.constant 0 : index
    %c0_0 = arith.constant 0 : index
    %0 = vector.load %arg1[%c0, %c0_0] : memref<8x8xf32, #tpu.memory_space<vmem>>, vector<8x8xf32>
    %c0_1 = arith.constant 0 : index
    %c0_2 = arith.constant 0 : index
    %1 = vector.load %arg2[%c0_1, %c0_2] : memref<8x128xf32, #tpu.memory_space<vmem>>, vector<8x128xf32>
    %cst = arith.constant dense<0.000000e+00> : vector<8x128xf32>
    %2 = tpu.matmul %0, %1, %cst {dimension_numbers = #tpu.dot_dimension_numbers<[1], [0], [0], [1], [0, 0, 1, 1], [], []>} : vector<8x8xf32>, vector<8x128xf32>, vector<8x128xf32> -> vector<8x128xf32>
    %c0_3 = arith.constant 0 : index
    %c0_4 = arith.constant 0 : index
    %3 = vector.load %arg3[%c0_3, %c0_4] : memref<1x128xf32, #tpu.memory_space<vmem>>, vector<1x128xf32>
    %4 = vector.broadcast %3 : vector<1x128xf32> to vector<8x128xf32>
    %5 = arith.addf %2, %4 : vector<8x128xf32>
    %cst_5 = arith.constant 0.000000e+00 : f32
    %6 = vector.broadcast %cst_5 : f32 to vector<8x128xf32>
    %7 = arith.maximumf %5, %6 : vector<8x128xf32>
    %c0_6 = arith.constant 0 : index
    %c0_7 = arith.constant 0 : index
    %8 = vector.load %arg4[%c0_6, %c0_7] : memref<128x64xf32, #tpu.memory_space<vmem>>, vector<128x64xf32>
    %cst_8 = arith.constant dense<0.000000e+00> : vector<8x64xf32>
    %9 = tpu.matmul %7, %8, %cst_8 {dimension_numbers = #tpu.dot_dimension_numbers<[1], [0], [0], [1], [0, 0, 1, 1], [], []>} : vector<8x128xf32>, vector<128x64xf32>, vector<8x64xf32> -> vector<8x64xf32>
    %c0_9 = arith.constant 0 : index
    %c0_10 = arith.constant 0 : index
    %10 = vector.load %arg5[%c0_9, %c0_10] : memref<1x64xf32, #tpu.memory_space<vmem>>, vector<1x64xf32>
    %11 = vector.broadcast %10 : vector<1x64xf32> to vector<8x64xf32>
    %12 = arith.addf %9, %11 : vector<8x64xf32>
    %cst_11 = arith.constant 0.000000e+00 : f32
    %13 = vector.broadcast %cst_11 : f32 to vector<8x64xf32>
    %14 = arith.maximumf %12, %13 : vector<8x64xf32>
    %c0_12 = arith.constant 0 : index
    %c0_13 = arith.constant 0 : index
    %15 = vector.load %arg6[%c0_12, %c0_13] : memref<64x32xf32, #tpu.memory_space<vmem>>, vector<64x32xf32>
    %cst_14 = arith.constant dense<0.000000e+00> : vector<8x32xf32>
    %16 = tpu.matmul %14, %15, %cst_14 {dimension_numbers = #tpu.dot_dimension_numbers<[1], [0], [0], [1], [0, 0, 1, 1], [], []>} : vector<8x64xf32>, vector<64x32xf32>, vector<8x32xf32> -> vector<8x32xf32>
    %c0_15 = arith.constant 0 : index
    %c0_16 = arith.constant 0 : index
    %17 = vector.load %arg7[%c0_15, %c0_16] : memref<1x32xf32, #tpu.memory_space<vmem>>, vector<1x32xf32>
    %18 = vector.broadcast %17 : vector<1x32xf32> to vector<8x32xf32>
    %19 = arith.addf %16, %18 : vector<8x32xf32>
    %cst_17 = arith.constant 0.000000e+00 : f32
    %20 = vector.broadcast %cst_17 : f32 to vector<8x32xf32>
    %21 = arith.maximumf %19, %20 : vector<8x32xf32>
    %c0_18 = arith.constant 0 : index
    %c0_19 = arith.constant 0 : index
    %22 = vector.load %arg8[%c0_18, %c0_19] : memref<32x4xf32, #tpu.memory_space<vmem>>, vector<32x4xf32>
    %cst_20 = arith.constant dense<0.000000e+00> : vector<8x4xf32>
    %23 = tpu.matmul %21, %22, %cst_20 {dimension_numbers = #tpu.dot_dimension_numbers<[1], [0], [0], [1], [0, 0, 1, 1], [], []>} : vector<8x32xf32>, vector<32x4xf32>, vector<8x4xf32> -> vector<8x4xf32>
    %c0_21 = arith.constant 0 : index
    %c0_22 = arith.constant 0 : index
    %24 = vector.load %arg9[%c0_21, %c0_22] : memref<1x4xf32, #tpu.memory_space<vmem>>, vector<1x4xf32>
    %25 = vector.broadcast %24 : vector<1x4xf32> to vector<8x4xf32>
    %26 = arith.addf %23, %25 : vector<8x4xf32>
    %c0_23 = arith.constant 0 : index
    %c0_24 = arith.constant 0 : index
    %27 = vector.load %arg10[%c0_23, %c0_24] : memref<8x4xf32, #tpu.memory_space<vmem>>, vector<8x4xf32>
    tpu.vector_store %arg10[%c0_23, %c0_24], %26 {strides = array<i32>} : memref<8x4xf32, #tpu.memory_space<vmem>>, vector<8x4xf32>,
    return
  }
  func.func @transform_0(%arg0: i32) -> (i32, i32) {
    %c0_i32 = arith.constant 0 : i32
    %c0_i32_0 = arith.constant 0 : i32
    return %arg0, %c0_i32 : i32, i32
  }
  func.func @transform_1(%arg0: i32) -> (i32, i32) {
    %c0_i32 = arith.constant 0 : i32
    %c0_i32_0 = arith.constant 0 : i32
    %c0_i32_1 = arith.constant 0 : i32
    return %c0_i32, %c0_i32_0 : i32, i32
  }
  func.func @transform_2(%arg0: i32) -> (i32, i32) {
    %c0_i32 = arith.constant 0 : i32
    %c0_i32_0 = arith.constant 0 : i32
    %c0_i32_1 = arith.constant 0 : i32
    return %c0_i32, %c0_i32_0 : i32, i32
  }
  func.func @transform_3(%arg0: i32) -> (i32, i32) {
    %c0_i32 = arith.constant 0 : i32
    %c0_i32_0 = arith.constant 0 : i32
    %c0_i32_1 = arith.constant 0 : i32
    return %c0_i32, %c0_i32_0 : i32, i32
  }
  func.func @transform_4(%arg0: i32) -> (i32, i32) {
    %c0_i32 = arith.constant 0 : i32
    %c0_i32_0 = arith.constant 0 : i32
    %c0_i32_1 = arith.constant 0 : i32
    return %c0_i32, %c0_i32_0 : i32, i32
  }
  func.func @transform_5(%arg0: i32) -> (i32, i32) {
    %c0_i32 = arith.constant 0 : i32
    %c0_i32_0 = arith.constant 0 : i32
    %c0_i32_1 = arith.constant 0 : i32
    return %c0_i32, %c0_i32_0 : i32, i32
  }
  func.func @transform_6(%arg0: i32) -> (i32, i32) {
    %c0_i32 = arith.constant 0 : i32
    %c0_i32_0 = arith.constant 0 : i32
    %c0_i32_1 = arith.constant 0 : i32
    return %c0_i32, %c0_i32_0 : i32, i32
  }
  func.func @transform_7(%arg0: i32) -> (i32, i32) {
    %c0_i32 = arith.constant 0 : i32
    %c0_i32_0 = arith.constant 0 : i32
    %c0_i32_1 = arith.constant 0 : i32
    return %c0_i32, %c0_i32_0 : i32, i32
  }
  func.func @transform_8(%arg0: i32) -> (i32, i32) {
    %c0_i32 = arith.constant 0 : i32
    %c0_i32_0 = arith.constant 0 : i32
    %c0_i32_1 = arith.constant 0 : i32
    return %c0_i32, %c0_i32_0 : i32, i32
  }
  func.func @transform_9(%arg0: i32) -> (i32, i32) {
    %c0_i32 = arith.constant 0 : i32
    %c0_i32_0 = arith.constant 0 : i32
    return %arg0, %c0_i32 : i32, i32
  }
}

</mosaic_0001>

<bundles_post_ra>
// kernel: qnetwork_forward.1
= control target key start
LH: loop header
LB: loop body
LE: loop exit
PB: predicated region body
PF: predicated region fallthrough
CT: control target
= control target key end

     0   :  { %14 = vsyncpa [#allocation3], 0  ;;  %v541_v2 = vmov 0.0   ;;  %vm542_vm0 = vmmov 0   ;;  %vm42_vm1 = vcmask 64512   ;;  %vm226_vm2 = vcmask 523264   ;;  %s738_s0 = inlined_call_operand.vmem [shape: f32[2,8], index: 0, kind: input, shape index: {}]   ;;  %s739_s1 = inlined_call_operand.vmem [shape: f32[8,128], index: 1, kind: input, shape index: {}]   ;;  %s740_s2 = inlined_call_operand.vmem [shape: f32[1,128], index: 2, kind: input, shape index: {}]   ;;  %s741_s3 = inlined_call_operand.vmem [shape: f32[128,64], index: 3, kind: input, shape index: {}]   ;;  %s742_s4 = inlined_call_operand.vmem [shape: f32[1,64], index: 4, kind: input, shape index: {}]   ;;  %s743_s5 = inlined_call_operand.vmem [shape: f32[64,32], index: 5, kind: input, shape index: {}]   ;;  %s744_s6 = inlined_call_operand.vmem [shape: f32[1,32], index: 6, kind: input, shape index: {}]   ;;  %s745_s7 = inlined_call_operand.vmem [shape: f32[32,4], index: 7, kind: input, shape index: {}]   ;;  %s746_s8 = inlined_call_operand.vmem [shape: f32[1,4], index: 8, kind: input, shape index: {}]   ;;  %s747_s9 = inlined_call_operand.hbm [shape: f32[2,4], index: 9, kind: output, shape index: {}]  }
   0x1   :  { %v34_v0 = vld [vmem:[%s739_s1] sm:$0xff]  ;;  %444 = vmatprep.subr.mxu0 %v541_v2  ;;  %446 = vmatprep.mubr.msk.f32.mxu0 %vm542_vm0, %v541_v2  ;;  %v132_v3 = vld [vmem:[%s741_s3 + $0x78] sm:$0xff]  ;;  %v131_v4 = vld [vmem:[%s741_s3 + $0x70] sm:$0xff]  ;;  %vm312_vm3 = vcmask 261120   ;;  %vm386_vm4 = vcmask 31744  }
   0x2   :  { %v33_v1 = vld [vmem:[%s738_s0] sm:$0xff]  ;;  %445 = vmatpush3.msra.mxu0 %v34_v0  ;;  %449 = vmatprep.subr.mxu1 %v541_v2  ;;  %v130_v5 = vld [vmem:[%s741_s3 + $0x68] sm:$0xff]  ;;  %v128_v7 = vld [vmem:[%s741_s3 + $0x58] sm:$0xff] }
   0x3   :  { %447 = vmatmul.mubr.msk.f32.vlgmr.msra.gmra.mxu0 %vm42_vm1, %v33_v1  ;;  %450 = vmatpush3.msra.mxu1 %v132_v3  ;;  %v129_v6 = vld [vmem:[%s741_s3 + $0x60] sm:$0xff]  ;;  %v127_v8 = vld [vmem:[%s741_s3 + $0x50] sm:$0xff]  ;;  %v126_v9 = vld [vmem:[%s741_s3 + $0x48] sm:$0xff] }
   0x4   :  { %451 = vmatprep.subr.mxu1 %v541_v2  ;;  %481 = vmatprep.mubr.msk.f32.mxu1 %vm542_vm0, %v541_v2  ;;  %v125_v10 = vld [vmem:[%s741_s3 + $0x40] sm:$0xff]  ;;  %v124_v11 = vld [vmem:[%s741_s3 + $0x38] sm:$0xff]  ;;  %v123_v12 = vld [vmem:[%s741_s3 + $0x30] sm:$0xff] }
   0x5   :  { %452 = vmatpush3.msra.mxu1 %v131_v4  ;;  %484 = vmatprep.subr.mxu0 %v541_v2  ;;  %v122_v13 = vld [vmem:[%s741_s3 + $0x28] sm:$0xff]  ;;  %v121_v14 = vld [vmem:[%s741_s3 + $0x20] sm:$0xff]  ;;  %v120_v15 = vld [vmem:[%s741_s3 + $0x18] sm:$0xff] }
   0x6   :  { %453 = vmatprep.subr.mxu1 %v541_v2  ;;  %500 = vmatprep.mubr.msk.f32.mxu0 %vm542_vm0, %v541_v2  ;;  %v119_v16 = vld [vmem:[%s741_s3 + $0x10] sm:$0xff]  ;;  %v118_v17 = vld [vmem:[%s741_s3 + $0x8] sm:$0xff]  ;;  %v117_v18 = vld [vmem:[%s741_s3] sm:$0xff] }
   0x7   :  { %454 = vmatpush3.msra.mxu1 %v130_v5  ;;  %v218_v19 = vld [vmem:[%s743_s5 + $0x38] sm:$0xff]  ;;  %v217_v20 = vld [vmem:[%s743_s5 + $0x30] sm:$0xff]  ;;  %v216_v21 = vld [vmem:[%s743_s5 + $0x28] sm:$0xff] }
   0x8   :  { %455 = vmatprep.subr.mxu1 %v541_v2  ;;  %485 = vmatpush3.msra.mxu0 %v218_v19  ;;  %v215_v22 = vld [vmem:[%s743_s5 + $0x20] sm:$0xff]  ;;  %v214_v23 = vld [vmem:[%s743_s5 + $0x18] sm:$0xff]  ;;  %v213_v29 = vld [vmem:[%s743_s5 + $0x10] sm:$0xff] }
   0x9   :  { %456 = vmatpush3.msra.mxu1 %v129_v6  ;;  %486 = vmatprep.subr.mxu0 %v541_v2  ;;  %v404_v24 = vld [vmem:[%s740_s2] ss:$0 sm:$0xff]  ;;  %v212_v30 = vld [vmem:[%s743_s5 + $0x8] sm:$0xff]  ;;  %v304_v37 = vld [vmem:[%s745_s7 + $0x18] sm:$0xff] }
   0xa   :  { %457 = vmatprep.subr.mxu1 %v541_v2  ;;  %487 = vmatpush3.msra.mxu0 %v217_v20  ;;  %v211_v31 = vld [vmem:[%s743_s5] sm:$0xff]  ;;  %v303_v38 = vld [vmem:[%s745_s7 + $0x10] sm:$0xff]  ;;  %v302_v39 = vld [vmem:[%s745_s7 + $0x8] sm:$0xff] }
   0xb   :  { %458 = vmatpush3.msra.mxu1 %v128_v7  ;;  %488 = vmatprep.subr.mxu0 %v541_v2  ;;  %v406_v32 = vld [vmem:[%s742_s4] ss:$0 sm:$0xff] }
   0xc   :  { %459 = vmatprep.subr.mxu1 %v541_v2  ;;  %489 = vmatpush3.msra.mxu0 %v216_v21  ;;  %v301_v40 = vld [vmem:[%s745_s7] sm:$0xff] }
   0xd   :  { %460 = vmatpush3.msra.mxu1 %v127_v8  ;;  %490 = vmatprep.subr.mxu0 %v541_v2  ;;  %v407_v41 = vld [vmem:[%s744_s6] ss:$0 sm:$0xff] }
   0xe   :  { %461 = vmatprep.subr.mxu1 %v541_v2  ;;  %491 = vmatpush3.msra.mxu0 %v215_v22  ;;  %v409_v46 = vld [vmem:[%s746_s8] ss:$0 sm:$0xff] }
   0xf   :  { %462 = vmatpush3.msra.mxu1 %v126_v9  ;;  %492 = vmatprep.subr.mxu0 %v541_v2 }
  0x10   :  { %463 = vmatprep.subr.mxu1 %v541_v2  ;;  %493 = vmatpush3.msra.mxu0 %v214_v23 }
  0x11   :  { %464 = vmatpush3.msra.mxu1 %v125_v10  ;;  %494 = vmatprep.subr.mxu0 %v541_v2 }
  0x12   :  { %465 = vmatprep.subr.mxu1 %v541_v2  ;;  %495 = vmatpush3.msra.mxu0 %v213_v29 }
  0x13   :  { %466 = vmatpush3.msra.mxu1 %v124_v11  ;;  %496 = vmatprep.subr.mxu0 %v541_v2 }
  0x14   :  { %467 = vmatprep.subr.mxu1 %v541_v2  ;;  %497 = vmatpush3.msra.mxu0 %v212_v30 }
  0x15   :  { %468 = vmatpush3.msra.mxu1 %v123_v12  ;;  %498 = vmatprep.subr.mxu0 %v541_v2 }
  0x16   :  { %469 = vmatprep.subr.mxu1 %v541_v2  ;;  %499 = vmatpush3.msra.mxu0 %v211_v31 }
  0x17   :  { %470 = vmatpush3.msra.mxu1 %v122_v13  ;;  %503 = vmatprep.subr.mxu0 %v541_v2 }
  0x18   :  { %471 = vmatprep.subr.mxu1 %v541_v2 }
  0x19   :  { %472 = vmatpush3.msra.mxu1 %v121_v14 }
  0x1a   :  { %473 = vmatprep.subr.mxu1 %v541_v2 }
  0x1b   :  { %474 = vmatpush3.msra.mxu1 %v120_v15 }
  0x1c   :  { %475 = vmatprep.subr.mxu1 %v541_v2 }
  0x1d   :  { %476 = vmatpush3.msra.mxu1 %v119_v16 }
  0x1e   :  { %477 = vmatprep.subr.mxu1 %v541_v2 }
  0x1f   :  { %478 = vmatpush3.msra.mxu1 %v118_v17 }
  0x20   :  { %479 = vmatprep.subr.mxu1 %v541_v2 }
  0x21   :  { %480 = vmatpush3.msra.mxu1 %v117_v18 }
  0xc3   :  { %v112_v25 = vpop.f32.mrf.mxu0 }
  0xc4   :  { %v113_v26 = vadd.f32 %v404_v24, %v112_v25 }
  0xc5   :  { %v448_v27 = vpop.f32.mrf.mxu0 }
  0xc6   :  { %v116_v28 = vmax.f32 %v113_v26, 0.0 }
  0xc8   :  { %482 = vmatmul.mubr.f32.vlgmr.msra.gmra.mxu1 %v116_v28 }
 0x188   :  { %v206_v33 = vpop.f32.mrf.mxu1 }
 0x189   :  { %v207_v34 = vadd.f32 %v406_v32, %v206_v33 }
 0x18a   :  { %v483_v35 = vpop.f32.mrf.mxu1 }
 0x18b   :  { %v210_v36 = vmax.f32 %v207_v34, 0.0 }
 0x18d   :  { %501 = vmatmul.mubr.msk.f32.vlgmr.msra.gmra.mxu0 %vm226_vm2, %v210_v36 }
 0x18e   :  { %504 = vmatpush3.msra.mxu0 %v304_v37  ;;  %511 = vmatprep.mubr.msk.f32.mxu0 %vm542_vm0, %v541_v2 }
 0x18f   :  { %505 = vmatprep.subr.mxu0 %v541_v2 }
 0x190   :  { %506 = vmatpush3.msra.mxu0 %v303_v38 }
 0x191   :  { %507 = vmatprep.subr.mxu0 %v541_v2 }
 0x192   :  { %508 = vmatpush3.msra.mxu0 %v302_v39 }
 0x193   :  { %509 = vmatprep.subr.mxu0 %v541_v2 }
 0x194   :  { %510 = vmatpush3.msra.mxu0 %v301_v40 }
 0x24d   :  { %v296_v42 = vpop.f32.mrf.mxu0 }
 0x24e   :  { %v297_v43 = vadd.f32 %v407_v41, %v296_v42 }
 0x24f   :  { %v502_v44 = vpop.f32.mrf.mxu0 }
 0x250   :  { %v300_v45 = vmax.f32 %v297_v43, 0.0 }
 0x252   :  { %512 = vmatmul.mubr.msk.f32.vlgmr.msra.gmra.mxu0 %vm312_vm3, %v300_v45 }
 0x312   :  { %v382_v47 = vpop.f32.mrf.mxu0 }
 0x313   :  { %v383_v48 = vadd.f32 %v409_v46, %v382_v47 }
 0x314   :  { %v513_v49 = vpop.f32.mrf.mxu0 }
 0x315   :  { %387 = vst.msk [vmem:[#allocation2] sm:$0xff] %vm386_vm4, %v383_v48 }
 0x316   :  { %392 = vsyncadd [#allocation3], 96  ;;  %s543_s7 = smov [#allocation2]  }
 0x317   :  { %s393_s25 = sshll.u32 %s543_s7, 4  ;;  %s394_s25 = int_to_ptr.vmem [resolvable:$true] %s393_s25 }
 0x318   :  { %s519_s6 = scalar_lea.vmem %s394_s25, 32  ;;  %s523_s3 = scalar_lea.vmem %s394_s25, 128 }
 0x319   :  { %p520_p0 = scmp.ne.s32.totalorder %s394_s25, %s519_s6  ;;  %p524_p1 = scmp.lt.s32.totalorder %s394_s25, %s394_s25 }
 0x31a   :  { %p525_p2 = scmp.lt.s32.totalorder %s523_s3, %s519_s6 }
 0x31c   :  { %p526_p3 = por %p525_p2, %p524_p1 }
 0x31e   :  { %p527_p4 = pnand %p526_p3, %p520_p0 }
 0x320   :  { %530 = shalt.err (!%p527_p4)
}
 0x321   :  { %s544_s26 = smov 32   ;;  %s545_s27 = smov 2  }
 0x322   :  { %399 = dma.vmem_to_hbm [thread:$0]  %s394_s25, 32, %s747_s9, [#allocation3], %s544_s26, %s544_s26, %s545_s27  }
 0x323   :  { %539 = dma.done.wait [#allocation3], 128  }
 0x324   :  { %540 = vsyncadd [#allocation3], 4294967168 }
 0x325   :  { %403 = vsyncpa [#allocation3], 1 }

</bundles_post_ra>
